<compile_context>
chip_gen: v7x
topology: tpu7x:2x2x1
jax: 0.10.0
libtpu: 0.0.40
codegen_flags: <defaults>
</compile_context>

<pallas_src>
import functools

import jax
import jax.numpy as jnp
from jax.experimental import pallas as pl
from jax.experimental.pallas import tpu as pltpu


def _rnn_agent_kernel(
    # activations
    x_ref, h_ref,
    # fc1
    w1_ref, b1_ref,
    # GRU fused input->hidden and hidden->hidden (columns ordered r|z|n)
    w_ih_ref, b_ih_ref, w_hh_ref, b_hh_ref,
    # fc2
    w2_ref, b2_ref,
    # outputs
    q_ref, hout_ref,
):
    H = h_ref.shape[1]
    x = x_ref[...]
    h = h_ref[...]

    # fc1 + ReLU (f32 accumulation), then back to the MXU dtype for the GRU matmul.
    xh = jnp.maximum(
        jnp.dot(x, w1_ref[...], preferred_element_type=jnp.float32) + b1_ref[...],
        0.0,
    ).astype(w_ih_ref.dtype)

    # Fused GRU gate matmuls: [TB, H] @ [H, 3H] -> [TB, 3H] f32 (3H = 96 <= 128 lanes).
    gi = jnp.dot(xh, w_ih_ref[...], preferred_element_type=jnp.float32) + b_ih_ref[...]
    gh = jnp.dot(h, w_hh_ref[...], preferred_element_type=jnp.float32) + b_hh_ref[...]

    # PyTorch GRUCell semantics:
    #   r = sigmoid(W_ir x + b_ir + W_hr h + b_hr)
    #   z = sigmoid(W_iz x + b_iz + W_hz h + b_hz)
    #   n = tanh  (W_in x + b_in + r * (W_hn h + b_hn))
    #   h' = (1 - z) * n + z * h
    # r|z fused on the contiguous [TB, 2H] slab (one sigmoid, fewer lane rotates).
    rz = jax.nn.sigmoid(gi[:, : 2 * H] + gh[:, : 2 * H])
    r = rz[:, :H]
    z = rz[:, H:]
    n = jnp.tanh(gi[:, 2 * H:] + r * gh[:, 2 * H:])

    h_new = (1.0 - z) * n + z * h.astype(jnp.float32)

    # fc2
    q = jnp.dot(h_new.astype(w2_ref.dtype), w2_ref[...],
                preferred_element_type=jnp.float32) + b2_ref[...]

    q_ref[...] = q.astype(q_ref.dtype)
    hout_ref[...] = h_new.astype(hout_ref.dtype)


def _round_up(x, m):
    return (x + m - 1) // m * m


def _cdiv(a, b):
    return (a + b - 1) // b


def _sublane_align(dtype):
    return {4: 8, 2: 16, 1: 32}[jnp.dtype(dtype).itemsize]


def rnn_agent_forward(inputs, hidden_state, params, *, batch_tile=2048,
                      compute_dtype=jnp.bfloat16):
    """Pallas implementation of RNNAgent.forward.

    inputs:        [B, input_shape]
    hidden_state:  [..., rnn_hidden_dim]  (reshaped to [-1, H] like PyTorch)
    returns (q [B, n_actions], h [B, H]) in `compute_dtype`.
    """
    IN, H = params["w1"].shape
    A = params["w2"].shape[1]
    B = inputs.shape[0]

    h_in = hidden_state.reshape(-1, H)
    assert h_in.shape[0] == B, (
        f"hidden_state rows ({h_in.shape[0]}) must match inputs batch ({B})")
    assert inputs.shape[1] == IN

    # Activations / weights in the compute dtype (bf16 by default); biases stay f32
    # since they are added onto f32 matmul accumulators anyway.
    x = inputs.astype(compute_dtype)
    h = h_in.astype(compute_dtype)
    w1 = params["w1"].astype(compute_dtype)
    w_ih = params["w_ih"].astype(compute_dtype)
    w_hh = params["w_hh"].astype(compute_dtype)
    w2 = params["w2"].astype(compute_dtype)
    b1 = params["b1"].astype(jnp.float32)
    b_ih = params["b_ih"].astype(jnp.float32)
    b_hh = params["b_hh"].astype(jnp.float32)
    b2 = params["b2"].astype(jnp.float32)

    # Batch tiling: tile is sublane-aligned; no batch padding — the tail block's
    # out-of-bounds rows are garbage on read (rows are independent) and clipped by
    # Pallas's bounded writeback DMA on store.
    sl = _sublane_align(compute_dtype)
    TB = min(batch_tile, _round_up(B, sl))
    # Give the 'parallel' batch axis >= 2 grid steps when possible so both v7x
    # TensorCores get work (an extra ~0.35us step is noise on single-TC v5e/v6e).
    if _cdiv(B, TB) == 1 and TB > sl:
        TB = _round_up(_cdiv(TB, 2), sl)
    grid = (_cdiv(B, TB),)

    def row_block(feat):
        return pl.BlockSpec((TB, feat), lambda i: (i, 0))

    def resident(shape):
        # Same block index every grid step -> stays resident in VMEM (no re-DMA).
        return pl.BlockSpec(shape, lambda i: (0, 0))

    args = (x, h, w1, b1, w_ih, b_ih, w_hh, b_hh, w2, b2)
    in_specs = [row_block(IN), row_block(H)] + [resident(a.shape) for a in args[2:]]
    out_specs = (row_block(A), row_block(H))

    q, h_out = pl.pallas_call(
        _rnn_agent_kernel,
        grid=grid,
        in_specs=in_specs,
        out_specs=out_specs,
        out_shape=(
            jax.ShapeDtypeStruct((B, A), compute_dtype),
            jax.ShapeDtypeStruct((B, H), compute_dtype),
        ),
        # Reuse the hidden-state input buffer for the new hidden state.
        input_output_aliases={1: 1},
        compiler_params=pltpu.CompilerParams(
            dimension_semantics=("parallel",),  # batch axis -> both v7x TCs; no-op on v5e/v6e
        ),
    )(*args)

    return q, h_out


def init_params(key, input_shape, rnn_hidden_dim, n_actions):
    """Deterministic parameter init (uniform, PyTorch-like bounds), pre-fused layout."""
    H = rnn_hidden_dim
    ks = jax.random.split(key, 8)

    def u(k, shape, fan_in):
        bound = 1.0 / (fan_in ** 0.5)
        return jax.random.uniform(k, shape, jnp.float32, -bound, bound)

    # fc1: Linear(input_shape, H), stored transposed [in, out].
    w1 = u(ks[0], (input_shape, H), input_shape)
    b1 = u(ks[1], (1, H), input_shape)

    # GRUCell(H, H): torch layout weight_ih/hh [3H, H] (rows r|z|n), biases [3H].
    w_ih = u(ks[2], (3 * H, H), H)
    w_hh = u(ks[3], (3 * H, H), H)
    b_ih = u(ks[4], (3 * H,), H)
    b_hh = u(ks[5], (3 * H,), H)

    # fc2: Linear(H, n_actions), transposed.
    w2 = u(ks[6], (H, n_actions), H)
    b2 = u(ks[7], (1, n_actions), H)

    return dict(
        w1=w1, b1=b1,
        # Fused, transposed GRU weights: [H, 3H] with column order r|z|n.
        w_ih=w_ih.T, b_ih=b_ih[None, :],
        w_hh=w_hh.T, b_hh=b_hh[None, :],
        w2=w2, b2=b2,
    )


def reference_forward(inputs, hidden_state, p):
    """Pure-JAX reference mirroring torch GRUCell semantics (for verification)."""
    H = p["w1"].shape[1]
    x = jnp.maximum(inputs @ p["w1"] + p["b1"], 0.0)
    h = hidden_state.reshape(-1, H)
    gi = x @ p["w_ih"] + p["b_ih"]
    gh = h @ p["w_hh"] + p["b_hh"]
    i_r, i_z, i_n = gi[:, :H], gi[:, H:2 * H], gi[:, 2 * H:]
    h_r, h_z, h_n = gh[:, :H], gh[:, H:2 * H], gh[:, 2 * H:]
    r = jax.nn.sigmoid(i_r + h_r)
    z = jax.nn.sigmoid(i_z + h_z)
    n = jnp.tanh(i_n + r * h_n)
    h_new = (1.0 - z) * n + z * h
    q = h_new @ p["w2"] + p["b2"]
    return q, h_new


if __name__ == "__main__":
    INPUT_SHAPE = 16    # per-agent observation size
    HIDDEN = 32         # rnn_hidden_dim
    N_ACTIONS = 8

    key = jax.random.PRNGKey(0)
    k_param, k_x, k_h, k_x2, k_h2 = jax.random.split(key, 5)
    params = init_params(k_param, INPUT_SHAPE, HIDDEN, N_ACTIONS)

    # --- small single-tile case, f32 compute (exact check vs. reference) ---
    B = 4
    inputs = jax.random.normal(k_x, (B, INPUT_SHAPE), jnp.float32)
    hidden = jax.random.normal(k_h, (B, HIDDEN), jnp.float32)

    fwd_f32 = jax.jit(functools.partial(
        rnn_agent_forward, params=params, compute_dtype=jnp.float32))
    q, h = fwd_f32(inputs, hidden)
    jax.block_until_ready((q, h))

    q_ref, h_ref = reference_forward(inputs, hidden, params)
    assert q.shape == (B, N_ACTIONS) and h.shape == (B, HIDDEN)
    assert jnp.allclose(q, q_ref, atol=1e-5, rtol=1e-5)
    assert jnp.allclose(h, h_ref, atol=1e-5, rtol=1e-5)

    # --- multi-block case with an uneven tail block (B=20, tile=8 -> grid=3),
    #     f32 compute; exercises the no-pad tail-clipping path ---
    B2 = 20
    inputs2 = jax.random.normal(k_x2, (B2, INPUT_SHAPE), jnp.float32)
    hidden2 = jax.random.normal(k_h2, (B2, HIDDEN), jnp.float32)

    fwd2 = jax.jit(functools.partial(
        rnn_agent_forward, params=params, batch_tile=8, compute_dtype=jnp.float32))
    q2, h2 = fwd2(inputs2, hidden2)
    jax.block_until_ready((q2, h2))

    q2_ref, h2_ref = reference_forward(inputs2, hidden2, params)
    assert q2.shape == (B2, N_ACTIONS) and h2.shape == (B2, HIDDEN)
    assert jnp.allclose(q2, q2_ref, atol=1e-5, rtol=1e-5)
    assert jnp.allclose(h2, h2_ref, atol=1e-5, rtol=1e-5)

    # --- default bf16 path (halved HBM traffic, f32 accumulation); also exercises
    #     the tile-split that keeps >= 2 grid steps for v7x ---
    fwd_bf16 = jax.jit(functools.partial(rnn_agent_forward, params=params))
    q3, h3 = fwd_bf16(inputs2, hidden2)
    jax.block_until_ready((q3, h3))

    assert q3.shape == (B2, N_ACTIONS) and h3.shape == (B2, HIDDEN)
    assert jnp.allclose(q3.astype(jnp.float32), q2_ref, atol=5e-2, rtol=5e-2)
    assert jnp.allclose(h3.astype(jnp.float32), h2_ref, atol=5e-2, rtol=5e-2)

    print("KERNEL_OK")
</pallas_src>

<mosaic_0001>
module attributes {stable_mosaic.version = 11 : i64} {
  func.func @_rnn_agent_kernel(%arg0: i32, %arg1: memref<8x16xf32, #tpu.memory_space<vmem>>, %arg2: memref<8x32xf32, #tpu.memory_space<vmem>>, %arg3: memref<16x32xf32, #tpu.memory_space<vmem>>, %arg4: memref<1x32xf32, #tpu.memory_space<vmem>>, %arg5: memref<32x96xf32, #tpu.memory_space<vmem>>, %arg6: memref<1x96xf32, #tpu.memory_space<vmem>>, %arg7: memref<32x96xf32, #tpu.memory_space<vmem>>, %arg8: memref<1x96xf32, #tpu.memory_space<vmem>>, %arg9: memref<32x8xf32, #tpu.memory_space<vmem>>, %arg10: memref<1x8xf32, #tpu.memory_space<vmem>>, %arg11: memref<8x8xf32, #tpu.memory_space<vmem>>, %arg12: memref<8x32xf32, #tpu.memory_space<vmem>>) attributes {dimension_semantics = [#tpu.dimension_semantics<parallel>], iteration_bounds = array<i64: 1>, scalar_prefetch = 0 : i64, scratch_operands = 0 : i64, tpu.core_type = #tpu.core_type<tc>, window_params = [{transform_indices = @transform_0, window_bounds = array<i64: 8, 16>}, {transform_indices = @transform_1, window_bounds = array<i64: 8, 32>}, {pipeline_mode = #tpu.pipeline_mode<synchronous>, transform_indices = @transform_2, window_bounds = array<i64: 16, 32>}, {pipeline_mode = #tpu.pipeline_mode<synchronous>, transform_indices = @transform_3, window_bounds = array<i64: 1, 32>}, {pipeline_mode = #tpu.pipeline_mode<synchronous>, transform_indices = @transform_4, window_bounds = array<i64: 32, 96>}, {pipeline_mode = #tpu.pipeline_mode<synchronous>, transform_indices = @transform_5, window_bounds = array<i64: 1, 96>}, {pipeline_mode = #tpu.pipeline_mode<synchronous>, transform_indices = @transform_6, window_bounds = array<i64: 32, 96>}, {pipeline_mode = #tpu.pipeline_mode<synchronous>, transform_indices = @transform_7, window_bounds = array<i64: 1, 96>}, {pipeline_mode = #tpu.pipeline_mode<synchronous>, transform_indices = @transform_8, window_bounds = array<i64: 32, 8>}, {pipeline_mode = #tpu.pipeline_mode<synchronous>, transform_indices = @transform_9, window_bounds = array<i64: 1, 8>}, {transform_indices = @transform_10, window_bounds = array<i64: 8, 8>}, {transform_indices = @transform_11, window_bounds = array<i64: 8, 32>}]} {
    %c0 = arith.constant 0 : index
    %c0_0 = arith.constant 0 : index
    %0 = vector.load %arg1[%c0, %c0_0] : memref<8x16xf32, #tpu.memory_space<vmem>>, vector<8x16xf32>
    %c0_1 = arith.constant 0 : index
    %c0_2 = arith.constant 0 : index
    %1 = vector.load %arg2[%c0_1, %c0_2] : memref<8x32xf32, #tpu.memory_space<vmem>>, vector<8x32xf32>
    %c0_3 = arith.constant 0 : index
    %c0_4 = arith.constant 0 : index
    %2 = vector.load %arg3[%c0_3, %c0_4] : memref<16x32xf32, #tpu.memory_space<vmem>>, vector<16x32xf32>
    %cst = arith.constant dense<0.000000e+00> : vector<8x32xf32>
    %3 = tpu.matmul %0, %2, %cst {dimension_numbers = #tpu.dot_dimension_numbers<[1], [0], [0], [1], [0, 0, 1, 1], [], []>} : vector<8x16xf32>, vector<16x32xf32>, vector<8x32xf32> -> vector<8x32xf32>
    %c0_5 = arith.constant 0 : index
    %c0_6 = arith.constant 0 : index
    %4 = vector.load %arg4[%c0_5, %c0_6] : memref<1x32xf32, #tpu.memory_space<vmem>>, vector<1x32xf32>
    %5 = vector.broadcast %4 : vector<1x32xf32> to vector<8x32xf32>
    %6 = arith.addf %3, %5 : vector<8x32xf32>
    %cst_7 = arith.constant 0.000000e+00 : f32
    %7 = vector.broadcast %cst_7 : f32 to vector<8x32xf32>
    %8 = arith.maximumf %6, %7 : vector<8x32xf32>
    %c0_8 = arith.constant 0 : index
    %c0_9 = arith.constant 0 : index
    %9 = vector.load %arg5[%c0_8, %c0_9] : memref<32x96xf32, #tpu.memory_space<vmem>>, vector<32x96xf32>
    %cst_10 = arith.constant dense<0.000000e+00> : vector<8x96xf32>
    %10 = tpu.matmul %8, %9, %cst_10 {dimension_numbers = #tpu.dot_dimension_numbers<[1], [0], [0], [1], [0, 0, 1, 1], [], []>} : vector<8x32xf32>, vector<32x96xf32>, vector<8x96xf32> -> vector<8x96xf32>
    %c0_11 = arith.constant 0 : index
    %c0_12 = arith.constant 0 : index
    %11 = vector.load %arg6[%c0_11, %c0_12] : memref<1x96xf32, #tpu.memory_space<vmem>>, vector<1x96xf32>
    %12 = vector.broadcast %11 : vector<1x96xf32> to vector<8x96xf32>
    %13 = arith.addf %10, %12 : vector<8x96xf32>
    %c0_13 = arith.constant 0 : index
    %c0_14 = arith.constant 0 : index
    %14 = vector.load %arg7[%c0_13, %c0_14] : memref<32x96xf32, #tpu.memory_space<vmem>>, vector<32x96xf32>
    %cst_15 = arith.constant dense<0.000000e+00> : vector<8x96xf32>
    %15 = tpu.matmul %1, %14, %cst_15 {dimension_numbers = #tpu.dot_dimension_numbers<[1], [0], [0], [1], [0, 0, 1, 1], [], []>} : vector<8x32xf32>, vector<32x96xf32>, vector<8x96xf32> -> vector<8x96xf32>
    %c0_16 = arith.constant 0 : index
    %c0_17 = arith.constant 0 : index
    %16 = vector.load %arg8[%c0_16, %c0_17] : memref<1x96xf32, #tpu.memory_space<vmem>>, vector<1x96xf32>
    %17 = vector.broadcast %16 : vector<1x96xf32> to vector<8x96xf32>
    %18 = arith.addf %15, %17 : vector<8x96xf32>
    %19 = vector.extract_strided_slice %13 {offsets = [0, 0], sizes = [8, 64], strides = [1, 1]} : vector<8x96xf32> to vector<8x64xf32>
    %20 = vector.extract_strided_slice %18 {offsets = [0, 0], sizes = [8, 64], strides = [1, 1]} : vector<8x96xf32> to vector<8x64xf32>
    %21 = arith.addf %19, %20 : vector<8x64xf32>
    %22 = arith.negf %21 : vector<8x64xf32>
    %23 = math.exp %22 : vector<8x64xf32>
    %cst_18 = arith.constant 1.000000e+00 : f32
    %24 = vector.broadcast %cst_18 : f32 to vector<8x64xf32>
    %25 = arith.addf %24, %23 : vector<8x64xf32>
    %26 = arith.divf %24, %25 : vector<8x64xf32>
    %27 = vector.extract_strided_slice %26 {offsets = [0, 0], sizes = [8, 32], strides = [1, 1]} : vector<8x64xf32> to vector<8x32xf32>
    %28 = vector.extract_strided_slice %26 {offsets = [0, 32], sizes = [8, 32], strides = [1, 1]} : vector<8x64xf32> to vector<8x32xf32>
    %29 = vector.extract_strided_slice %13 {offsets = [0, 64], sizes = [8, 32], strides = [1, 1]} : vector<8x96xf32> to vector<8x32xf32>
    %30 = vector.extract_strided_slice %18 {offsets = [0, 64], sizes = [8, 32], strides = [1, 1]} : vector<8x96xf32> to vector<8x32xf32>
    %31 = arith.mulf %27, %30 : vector<8x32xf32>
    %32 = arith.addf %29, %31 : vector<8x32xf32>
    %33 = math.tanh %32 : vector<8x32xf32>
    %cst_19 = arith.constant 1.000000e+00 : f32
    %34 = vector.broadcast %cst_19 : f32 to vector<8x32xf32>
    %35 = arith.subf %34, %28 : vector<8x32xf32>
    %36 = arith.mulf %35, %33 : vector<8x32xf32>
    %37 = arith.mulf %28, %1 : vector<8x32xf32>
    %38 = arith.addf %36, %37 : vector<8x32xf32>
    %c0_20 = arith.constant 0 : index
    %c0_21 = arith.constant 0 : index
    %39 = vector.load %arg9[%c0_20, %c0_21] : memref<32x8xf32, #tpu.memory_space<vmem>>, vector<32x8xf32>
    %cst_22 = arith.constant dense<0.000000e+00> : vector<8x8xf32>
    %40 = tpu.matmul %38, %39, %cst_22 {dimension_numbers = #tpu.dot_dimension_numbers<[1], [0], [0], [1], [0, 0, 1, 1], [], []>} : vector<8x32xf32>, vector<32x8xf32>, vector<8x8xf32> -> vector<8x8xf32>
    %c0_23 = arith.constant 0 : index
    %c0_24 = arith.constant 0 : index
    %41 = vector.load %arg10[%c0_23, %c0_24] : memref<1x8xf32, #tpu.memory_space<vmem>>, vector<1x8xf32>
    %42 = vector.broadcast %41 : vector<1x8xf32> to vector<8x8xf32>
    %43 = arith.addf %40, %42 : vector<8x8xf32>
    %c0_25 = arith.constant 0 : index
    %c0_26 = arith.constant 0 : index
    %44 = vector.load %arg11[%c0_25, %c0_26] : memref<8x8xf32, #tpu.memory_space<vmem>>, vector<8x8xf32>
    tpu.vector_store %arg11[%c0_25, %c0_26], %43 {strides = array<i32>} : memref<8x8xf32, #tpu.memory_space<vmem>>, vector<8x8xf32>,
    %c0_27 = arith.constant 0 : index
    %c0_28 = arith.constant 0 : index
    %45 = vector.load %arg12[%c0_27, %c0_28] : memref<8x32xf32, #tpu.memory_space<vmem>>, vector<8x32xf32>
    tpu.vector_store %arg12[%c0_27, %c0_28], %38 {strides = array<i32>} : memref<8x32xf32, #tpu.memory_space<vmem>>, vector<8x32xf32>,
    return
  }
  func.func @transform_0(%arg0: i32) -> (i32, i32) {
    %c0_i32 = arith.constant 0 : i32
    %c0_i32_0 = arith.constant 0 : i32
    return %arg0, %c0_i32 : i32, i32
  }
  func.func @transform_1(%arg0: i32) -> (i32, i32) {
    %c0_i32 = arith.constant 0 : i32
    %c0_i32_0 = arith.constant 0 : i32
    return %arg0, %c0_i32 : i32, i32
  }
  func.func @transform_2(%arg0: i32) -> (i32, i32) {
    %c0_i32 = arith.constant 0 : i32
    %c0_i32_0 = arith.constant 0 : i32
    %c0_i32_1 = arith.constant 0 : i32
    return %c0_i32, %c0_i32_0 : i32, i32
  }
  func.func @transform_3(%arg0: i32) -> (i32, i32) {
    %c0_i32 = arith.constant 0 : i32
    %c0_i32_0 = arith.constant 0 : i32
    %c0_i32_1 = arith.constant 0 : i32
    return %c0_i32, %c0_i32_0 : i32, i32
  }
  func.func @transform_4(%arg0: i32) -> (i32, i32) {
    %c0_i32 = arith.constant 0 : i32
    %c0_i32_0 = arith.constant 0 : i32
    %c0_i32_1 = arith.constant 0 : i32
    return %c0_i32, %c0_i32_0 : i32, i32
  }
  func.func @transform_5(%arg0: i32) -> (i32, i32) {
    %c0_i32 = arith.constant 0 : i32
    %c0_i32_0 = arith.constant 0 : i32
    %c0_i32_1 = arith.constant 0 : i32
    return %c0_i32, %c0_i32_0 : i32, i32
  }
  func.func @transform_6(%arg0: i32) -> (i32, i32) {
    %c0_i32 = arith.constant 0 : i32
    %c0_i32_0 = arith.constant 0 : i32
    %c0_i32_1 = arith.constant 0 : i32
    return %c0_i32, %c0_i32_0 : i32, i32
  }
  func.func @transform_7(%arg0: i32) -> (i32, i32) {
    %c0_i32 = arith.constant 0 : i32
    %c0_i32_0 = arith.constant 0 : i32
    %c0_i32_1 = arith.constant 0 : i32
    return %c0_i32, %c0_i32_0 : i32, i32
  }
  func.func @transform_8(%arg0: i32) -> (i32, i32) {
    %c0_i32 = arith.constant 0 : i32
    %c0_i32_0 = arith.constant 0 : i32
    %c0_i32_1 = arith.constant 0 : i32
    return %c0_i32, %c0_i32_0 : i32, i32
  }
  func.func @transform_9(%arg0: i32) -> (i32, i32) {
    %c0_i32 = arith.constant 0 : i32
    %c0_i32_0 = arith.constant 0 : i32
    %c0_i32_1 = arith.constant 0 : i32
    return %c0_i32, %c0_i32_0 : i32, i32
  }
  func.func @transform_10(%arg0: i32) -> (i32, i32) {
    %c0_i32 = arith.constant 0 : i32
    %c0_i32_0 = arith.constant 0 : i32
    return %arg0, %c0_i32 : i32, i32
  }
  func.func @transform_11(%arg0: i32) -> (i32, i32) {
    %c0_i32 = arith.constant 0 : i32
    %c0_i32_0 = arith.constant 0 : i32
    return %arg0, %c0_i32 : i32, i32
  }
}

</mosaic_0001>

<bundles_post_ra>
// kernel: rnn_agent_forward.1
= control target key start
LH: loop header
LB: loop body
LE: loop exit
PB: predicated region body
PF: predicated region fallthrough
CT: control target
= control target key end

     0   :  { %17 = vsyncpa [#allocation3], 0  ;;  %s1055_s0 = inlined_call_operand.vmem [shape: f32[4,16], index: 0, kind: input, shape index: {}]   ;;  %s1056_s1 = inlined_call_operand.hbm [shape: f32[4,32], index: 1, kind: input, shape index: {}, may-alias: {1,11}]   ;;  %s1057_s2 = inlined_call_operand.hbm [shape: f32[16,32], index: 2, kind: input, shape index: {}]   ;;  %s1058_s3 = inlined_call_operand.hbm [shape: f32[1,32], index: 3, kind: input, shape index: {}]   ;;  %s1059_s4 = inlined_call_operand.hbm [shape: f32[32,96], index: 4, kind: input, shape index: {}]   ;;  %s1060_s5 = inlined_call_operand.hbm [shape: f32[1,96], index: 5, kind: input, shape index: {}]   ;;  %s1061_s6 = inlined_call_operand.hbm [shape: f32[32,96], index: 6, kind: input, shape index: {}]   ;;  %s1062_s7 = inlined_call_operand.vmem [shape: f32[1,96], index: 7, kind: input, shape index: {}]   ;;  %s1063_s8 = inlined_call_operand.vmem [shape: f32[32,8], index: 8, kind: input, shape index: {}]   ;;  %s1064_s9 = inlined_call_operand.vmem [shape: f32[1,8], index: 9, kind: input, shape index: {}]   ;;  %s1065_s10 = inlined_call_operand.hbm [shape: f32[4,8], index: 10, kind: output, shape index: {0}]   ;;  %s1066_s11 = inlined_call_operand.hbm [shape: f32[4,32], index: 11, kind: output, shape index: {1}, may-alias: {1,11}]  }
   0x1   :  { %18 = vsyncpa [#allocation6], 0 }
   0x2   :  { %19 = vsyncpa [#allocation9], 0 }
   0x3   :  { %20 = vsyncpa [#allocation12], 0 }
   0x4   :  { %21 = vsyncpa [#allocation4], 0 }
   0x5   :  { %22 = vsyncpa [#allocation15], 0 }
   0x6   :  { %29 = vsyncadd [#allocation3], 64  ;;  %s826_s17 = smov [#allocation5]   ;;  %s638_s21 = scalar_lea.hbm %s1057_s2, 256 }
   0x7   :  { %s42_s18 = sshll.u32 %s826_s17, 4  ;;  %p639_p0 = scmp.ne.s32.totalorder %s1057_s2, %s638_s21  ;;  %s43_s18 = int_to_ptr.vmem [resolvable:$true] %s42_s18 }
   0x8   :  { %p642_p1 = scmp.lt.u32.totalorder %s638_s21, %s1057_s2 }
   0xa   :  { %p644_p2 = pnand %p642_p1, %p639_p0 }
   0xc   :  { %647 = shalt.err (!%p644_p2)
}
   0xd   :  { %s648_s26 = scalar_lea.vmem %s43_s18, 256  ;;  %p653_p4 = scmp.lt.s32.totalorder %s43_s18, %s43_s18 }
   0xe   :  { %p649_p3 = scmp.ne.s32.totalorder %s43_s18, %s648_s26  ;;  %p654_p5 = scmp.lt.s32.totalorder %s648_s26, %s648_s26 }
  0x10   :  { %p655_p6 = por %p654_p5, %p653_p4 }
  0x12   :  { %p656_p7 = pnand %p655_p6, %p649_p3 }
  0x14   :  { %659 = shalt.err (!%p656_p7)
}
  0x15   :  { %s827_s27 = smov 128   ;;  %s828_s28 = smov 8  }
  0x16   :  { %48 = dma.hbm_to_vmem [thread:$0]  %s1057_s2, 256, %s43_s18, [#allocation6], %s827_s27, %s827_s27, %s828_s28  }
  0x17   :  { %s829_s12 = smov [#allocation8]   ;;  %s830_s14 = smov [#allocation2]  }
  0x18   :  { %s64_s13 = sshll.u32 %s829_s12, 4  ;;  %s30_s15 = sshll.u32 %s830_s14, 4  ;;  %s65_s13 = int_to_ptr.vmem [resolvable:$true] %s64_s13  ;;  %s31_s15 = int_to_ptr.vmem [resolvable:$true] %s30_s15 }
  0x19   :  { %s660_s19 = scalar_lea.hbm %s1059_s4, 512 }
  0x1a   :  { %p661_p8 = scmp.ne.s32.totalorder %s1059_s4, %s660_s19  ;;  %p664_p9 = scmp.lt.u32.totalorder %s660_s19, %s1059_s4 }
  0x1c   :  { %p666_p10 = pnand %p664_p9, %p661_p8 }
  0x1e   :  { %669 = shalt.err (!%p666_p10)
}
  0x1f   :  { %s670_s2 = scalar_lea.vmem %s65_s13, 512  ;;  %p675_p12 = scmp.lt.s32.totalorder %s65_s13, %s65_s13 }
  0x20   :  { %p671_p11 = scmp.ne.s32.totalorder %s65_s13, %s670_s2  ;;  %p676_p13 = scmp.lt.s32.totalorder %s670_s2, %s670_s2 }
  0x22   :  { %p677_p0 = por %p676_p13, %p675_p12 }
  0x24   :  { %p678_p1 = pnand %p677_p0, %p671_p11 }
  0x26   :  { %681 = shalt.err (!%p678_p1)
}
  0x27   :  { %70 = dma.hbm_to_vmem [thread:$0]  %s1059_s4, 512, %s65_s13, [#allocation9], %s827_s27, %s827_s27, %s828_s28  }
  0x28   :  { %s682_s29 = scalar_lea.hbm %s1056_s1, 64 }
  0x29   :  { %p683_p2 = scmp.ne.s32.totalorder %s1056_s1, %s682_s29  ;;  %p686_p3 = scmp.lt.u32.totalorder %s682_s29, %s1056_s1 }
  0x2b   :  { %p688_p4 = pnand %p686_p3, %p683_p2 }
  0x2d   :  { %691 = shalt.err (!%p688_p4)
}
  0x2e   :  { %s692_s17 = scalar_lea.vmem %s31_s15, 64  ;;  %s696_s19 = scalar_lea.vmem %s31_s15, 128 }
  0x2f   :  { %p693_p5 = scmp.ne.s32.totalorder %s31_s15, %s692_s17  ;;  %p697_p6 = scmp.lt.s32.totalorder %s31_s15, %s31_s15 }
  0x30   :  { %p698_p7 = scmp.lt.s32.totalorder %s696_s19, %s692_s17 }
  0x32   :  { %p699_p8 = por %p698_p7, %p697_p6 }
  0x34   :  { %p700_p9 = pnand %p699_p8, %p693_p5 }
  0x36   :  { %703 = shalt.err (!%p700_p9)
}
  0x37   :  { %s831_s4 = smov 64   ;;  %s832_s13 = smov 4  }
  0x38   :  { %36 = dma.hbm_to_vmem [thread:$0]  %s1056_s1, 64, %s31_s15, [#allocation3], %s831_s4, %s831_s4, %s832_s13  }
  0x39   :  { %s833_s22 = smov [#allocation7]   ;;  %s834_s2 = smov [#allocation10]  }
  0x3a   :  { %s55_s23 = sshll.u32 %s833_s22, 4  ;;  %s77_s18 = sshll.u32 %s834_s2, 4  ;;  %s56_s23 = int_to_ptr.vmem [resolvable:$true] %s55_s23  ;;  %s78_s18 = int_to_ptr.vmem [resolvable:$true] %s77_s18 }
  0x3b   :  { %s704_s26 = scalar_lea.hbm %s1058_s3, 16 }
  0x3c   :  { %p705_p10 = scmp.ne.s32.totalorder %s1058_s3, %s704_s26  ;;  %p708_p11 = scmp.lt.u32.totalorder %s704_s26, %s1058_s3 }
  0x3e   :  { %p710_p12 = pnand %p708_p11, %p705_p10 }
  0x40   :  { %713 = shalt.err (!%p710_p12)
}
  0x41   :  { %s714_s1 = scalar_lea.vmem %s56_s23, 16  ;;  %s718_s15 = scalar_lea.vmem %s56_s23, 32 }
  0x42   :  { %p715_p13 = scmp.ne.s32.totalorder %s56_s23, %s714_s1  ;;  %p719_p0 = scmp.lt.s32.totalorder %s56_s23, %s56_s23 }
  0x43   :  { %p720_p1 = scmp.lt.s32.totalorder %s718_s15, %s714_s1 }
  0x45   :  { %p721_p2 = por %p720_p1, %p719_p0 }
  0x47   :  { %p722_p3 = pnand %p721_p2, %p715_p13 }
  0x49   :  { %725 = shalt.err (!%p722_p3)
}
  0x4a   :  { %58 = dma.hbm_to_vmem [thread:$0]  %s1058_s3, 16, %s56_s23, [#allocation6]  }
  0x4b   :  { %s726_s21 = scalar_lea.hbm %s1060_s5, 16 }
  0x4c   :  { %p727_p4 = scmp.ne.s32.totalorder %s1060_s5, %s726_s21  ;;  %p730_p5 = scmp.lt.u32.totalorder %s726_s21, %s1060_s5 }
  0x4e   :  { %p732_p6 = pnand %p730_p5, %p727_p4 }
  0x50   :  { %735 = shalt.err (!%p732_p6)
}
  0x51   :  { %s736_s26 = scalar_lea.vmem %s78_s18, 16  ;;  %s740_s29 = scalar_lea.vmem %s78_s18, 32 }
  0x52   :  { %p737_p7 = scmp.ne.s32.totalorder %s78_s18, %s736_s26  ;;  %p741_p8 = scmp.lt.s32.totalorder %s78_s18, %s78_s18 }
  0x53   :  { %p742_p9 = scmp.lt.s32.totalorder %s740_s29, %s736_s26 }
  0x55   :  { %p743_p10 = por %p742_p9, %p741_p8 }
  0x57   :  { %p744_p11 = pnand %p743_p10, %p737_p7 }
  0x59   :  { %747 = shalt.err (!%p744_p11)
}
  0x5a   :  { %80 = dma.hbm_to_vmem [thread:$0]  %s1060_s5, 16, %s78_s18, [#allocation9]  }
  0x5b   :  { %s835_s30 = smov [#allocation11]   ;;  %s748_s15 = scalar_lea.hbm %s1061_s6, 512 }
  0x5c   :  { %s86_s12 = sshll.u32 %s835_s30, 4  ;;  %p749_p12 = scmp.ne.s32.totalorder %s1061_s6, %s748_s15  ;;  %s87_s12 = int_to_ptr.vmem [resolvable:$true] %s86_s12 }
  0x5d   :  { %p752_p13 = scmp.lt.u32.totalorder %s748_s15, %s1061_s6 }
  0x5f   :  { %p754_p0 = pnand %p752_p13, %p749_p12 }
  0x61   :  { %757 = shalt.err (!%p754_p0)
}
  0x62   :  { %s758_s21 = scalar_lea.vmem %s87_s12, 512  ;;  %p763_p2 = scmp.lt.s32.totalorder %s87_s12, %s87_s12 }
  0x63   :  { %p759_p1 = scmp.ne.s32.totalorder %s87_s12, %s758_s21  ;;  %p764_p3 = scmp.lt.s32.totalorder %s758_s21, %s758_s21 }
  0x65   :  { %p765_p4 = por %p764_p3, %p763_p2 }
  0x67   :  { %p766_p5 = pnand %p765_p4, %p759_p1 }
  0x69   :  { %769 = shalt.err (!%p766_p5)
}
  0x6a   :  { %92 = dma.hbm_to_vmem [thread:$0]  %s1061_s6, 512, %s87_s12, [#allocation12], %s827_s27, %s827_s27, %s828_s28  }
  0x6b   :  { %814 = dma.done.wait [#allocation3], 128  }
  0x6c   :  { %815 = vsyncadd [#allocation3], 4294967168 }
  0x6d   :  { %816 = dma.done.wait [#allocation6], 272  }
  0x6e   :  { %817 = vsyncadd [#allocation6], 4294967024 }
  0x6f   :  { %818 = dma.done.wait [#allocation9], 528  }
  0x70   :  { %819 = vsyncadd [#allocation9], 4294966768 }
  0x71   :  { %820 = dma.done.wait [#allocation12], 512  }
  0x72   :  { %821 = vsyncadd [#allocation12], 4294966784  ;;  %v836_v0 = vmov 0.0|0.0   ;;  %vm837_vm0 = vmmov 0   ;;  %v838_v1 = vmov 0.0   ;;  %v119_v2 = vld [vmem:[#allocation5] sm:$0xff] }
  0x73   :  { %594 = vmatprep.subr.bf16.mxu0 %v836_v0  ;;  %558 = vmatprep.mubr.msk.f32.mxu0 %vm837_vm0, %v838_v1  ;;  %v120_v3 = vld [vmem:[#allocation5 + $0x8] sm:$0xff]  ;;  %v288_v5 = vld [vmem:[#allocation11] sm:$0xff]  ;;  %v289_v6 = vld [vmem:[#allocation11 + $0x8] sm:$0xff]  ;;  %vm128_vm1 = vcmask 130048   ;;  %vm214_vm2 = vcmask 261120   ;;  %s839_s23 = smov 96  }
  0x74   :  { %597 = vmatprep.subr.bf16.mxu1 %v836_v0  ;;  %569 = vmatprep.mubr.msk.f32.mxu1 %vm837_vm0, %v838_v1  ;;  %v595_v4 = vpack.c.bf16 %v120_v3, %v119_v2  ;;  %v203_v7 = vld [vmem:[#allocation8] sm:$0xff]  ;;  %v604_v9 = vpack.c.bf16 %v289_v6, %v288_v5  ;;  %v204_v10 = vld [vmem:[#allocation8 + $0x8] sm:$0xff]  ;;  %v290_v11 = vld [vmem:[#allocation11 + $0x10] sm:$0xff]  ;;  %s840_s30 = smov 32   ;;  %vm487_vm3 = vcmask 64512  }
  0x75   :  { %v117_v8 = vld [vmem:[%s1055_s0] sm:$0xff]  ;;  %v598_v13 = vpack.c.bf16 %v204_v10, %v203_v7  ;;  %v118_v15 = vld [vmem:[#allocation2] sm:$0xff]  ;;  %v205_v16 = vld [vmem:[#allocation8 + $0x10] sm:$0xff] }
  0x76   :  { %596 = vmatpush3.bf16.msra.mxu0 %v595_v4  ;;  %v291_v12 = vld [vmem:[#allocation11 + $0x18] sm:$0xff]  ;;  %v402_v42 = vld [vmem:[%s1063_s8 + $0x8] sm:$0xff]  ;;  %v403_v43 = vld [vmem:[%s1063_s8 + $0x10] sm:$0xff] }
  0x77   :  { %603 = vmatprep.subr.bf16.mxu0 %v836_v0  ;;  %599 = vmatpush3.bf16.msra.mxu1 %v598_v13  ;;  %v607_v14 = vpack.c.bf16 %v291_v12, %v290_v11  ;;  %v206_v17 = vld [vmem:[#allocation8 + $0x18] sm:$0xff]  ;;  %v529_v28 = vld [vmem:[#allocation10] ss:$0 sm:$0xff] }
  0x78   :  { %600 = vmatprep.subr.bf16.mxu1 %v836_v0  ;;  %v601_v18 = vpack.c.bf16 %v206_v17, %v205_v16  ;;  %v527_v19 = vld [vmem:[#allocation7] ss:$0 sm:$0xff]  ;;  %v404_v45 = vld [vmem:[%s1063_s8 + $0x18] sm:$0xff] }
  0x79   :  { %559 = vmatmul.mubr.msk.f32.vlgmr.msra.gmra.mrb[0].mxu0 %vm128_vm1, %v117_v8  ;;  %v531_v24 = vld [vmem:[%s1062_s7] ss:$0 sm:$0xff]  ;;  %v613_v46 = vpack.c.bf16 %v404_v45, %v403_v43 }
  0x7a   :  { %605 = vmatpush3.bf16.msra.mxu0 %v604_v9  ;;  %580 = vmatprep.mubr.msk.f32.mxu0 %vm837_vm0, %v838_v1  ;;  %v401_v41 = vld [vmem:[%s1063_s8] sm:$0xff] }
  0x7b   :  { %606 = vmatprep.subr.bf16.mxu0 %v836_v0  ;;  %602 = vmatpush3.bf16.msra.mxu1 %v601_v18  ;;  %v610_v44 = vpack.c.bf16 %v402_v42, %v401_v41  ;;  %v534_v55 = vld [vmem:[%s1064_s9] ss:$0 sm:$0xff] }
  0x7c   :  { %609 = vmatprep.subr.bf16.mxu1 %v836_v0 }
  0x7e   :  { %608 = vmatpush3.bf16.msra.mxu0 %v607_v14 }
  0x81   :  { %581 = vmatmul.mubr.msk.f32.vlgmr.msra.gmra.mrb[2].mxu0 %vm214_vm2, %v118_v15 }
 0x14c   :  { %v198_v20 = vpop.f32.mrb[0].mxu0 }
 0x14d   :  { %v199_v21 = vadd.f32 %v527_v19, %v198_v20  ;;  %v560_v22 = vpop.f32.mrb[1].mxu0 }
 0x14f   :  { %v202_v23 = vmax.f32 %v199_v21, 0.0 }
 0x151   :  { %570 = vmatmul.mubr.msk.f32.vlgmr.msra.gmra.mrb[0].mxu1 %vm214_vm2, %v202_v23 }
 0x152   :  { %591 = vmatprep.mubr.msk.f32.mxu1 %vm837_vm0, %v838_v1  ;;  %611 = vmatpush3.bf16.msra.mxu1 %v610_v44 }
 0x153   :  { %612 = vmatprep.subr.bf16.mxu1 %v836_v0 }
 0x154   :  { %v368_v25 = vpop.f32.mrb[2].mxu0 }
 0x155   :  { %v369_v26 = vadd.f32 %v531_v24, %v368_v25  ;;  %v582_v27 = vpop.f32.mrb[3].mxu0 }
 0x156   :  { %614 = vmatpush3.bf16.msra.mxu1 %v613_v46 }
 0x157   :  { %380 = vrot.lane.b32.xlu0 %v369_v26, %s831_s4 }
 0x1c9   :  { %v381_v36 = vpop.permute.xlu0 %380 }
 0x224   :  { %v284_v29 = vpop.f32.mrb[0].mxu1 }
 0x225   :  { %v285_v30 = vadd.f32 %v529_v28, %v284_v29  ;;  %v571_v31 = vpop.f32.mrb[1].mxu1 }
 0x227   :  { %v372_v32 = vadd.f32 %v369_v26, %v285_v30 }
 0x229   :  { %v533_v33 = vmul.f32 -1.442695, %v372_v32 }
 0x22b   :  { %632 = vpow2.f32 %v533_v33 }
 0x235   :  { %v633_v34 = vpop.eup %632 }
 0x236   :  { %v376_v35 = vadd.f32 1.0, %v633_v34 }
 0x238   :  { %634 = vrcp.f32 %v376_v35 }
 0x242   :  { %v635_v37 = vpop.eup %634 }
 0x243   :  { %v383_v38 = vmul.f32 %v635_v37, %v381_v36  ;;  %v390_v49 = vsub.f32 1.0, %v635_v37 }
 0x245   :  { %385 = vrot.lane.b32.xlu0 %v383_v38, %s831_s4 }
 0x2b7   :  { %v386_v39 = vpop.permute.xlu0 %385 }
 0x2b8   :  { %v388_v40 = vadd.f32 %v386_v39, %v285_v30 }
 0x2ba   :  { %636 = vtanh.f32 %v388_v40 }
 0x2c4   :  { %v637_v47 = vpop.eup %636 }
 0x2c5   :  { %392 = vrot.lane.b32.xlu1 %v637_v47, %s839_s23 }
 0x2c9   :  { %396 = vrot.lane.b32.xlu1 %v118_v15, %s840_s30 }
 0x337   :  { %v393_v48 = vpop.permute.xlu1 %392 }
 0x338   :  { %v395_v51 = vmul.f32 %v393_v48, %v390_v49 }
 0x33b   :  { %v397_v50 = vpop.permute.xlu1 %396 }
 0x33c   :  { %v399_v52 = vmul.f32 %v635_v37, %v397_v50 }
 0x33e   :  { %v400_v53 = vadd.f32 %v399_v52, %v395_v51 }
 0x340   :  { %413 = vrot.lane.b32.xlu0 %v400_v53, %s839_s23 }
 0x3b2   :  { %v414_v54 = vpop.permute.xlu0 %413 }
 0x3b3   :  { %490 = vst.msk [vmem:[#allocation14] sm:$0xff] %vm214_vm2, %v414_v54  ;;  %592 = vmatmul.mubr.msk.f32.vlgmr.msra.gmra.mrb[2].mxu1 %vm214_vm2, %v414_v54 }
 0x486   :  { %v483_v56 = vpop.f32.mrb[2].mxu1 }
 0x487   :  { %v484_v57 = vadd.f32 %v534_v55, %v483_v56  ;;  %v593_v58 = vpop.f32.mrb[3].mxu1 }
 0x489   :  { %488 = vst.msk [vmem:[#allocation13] sm:$0xff] %vm487_vm3, %v484_v57 }
 0x48a   :  { %495 = vsyncadd [#allocation4], 64  ;;  %s841_s14 = smov [#allocation13]  }
 0x48b   :  { %s496_s1 = sshll.u32 %s841_s14, 4  ;;  %s497_s1 = int_to_ptr.vmem [resolvable:$true] %s496_s1 }
 0x48c   :  { %s770_s15 = scalar_lea.vmem %s497_s1, 64  ;;  %s774_s16 = scalar_lea.vmem %s497_s1, 128 }
 0x48d   :  { %p771_p6 = scmp.ne.s32.totalorder %s497_s1, %s770_s15  ;;  %p775_p7 = scmp.lt.s32.totalorder %s497_s1, %s497_s1 }
 0x48e   :  { %p776_p8 = scmp.lt.s32.totalorder %s774_s16, %s770_s15 }
 0x490   :  { %p777_p9 = por %p776_p8, %p775_p7 }
 0x492   :  { %p778_p10 = pnand %p777_p9, %p771_p6 }
 0x494   :  { %781 = shalt.err (!%p778_p10)
}
 0x495   :  { %s782_s9 = scalar_lea.hbm %s1065_s10, 64 }
 0x496   :  { %p783_p11 = scmp.ne.s32.totalorder %s1065_s10, %s782_s9  ;;  %p786_p12 = scmp.lt.u32.totalorder %s782_s9, %s1065_s10 }
 0x498   :  { %p788_p13 = pnand %p786_p12, %p783_p11 }
 0x49a   :  { %791 = shalt.err (!%p788_p13)
}
 0x49b   :  { %502 = dma.vmem_to_hbm [thread:$0]  %s497_s1, 64, %s1065_s10, [#allocation4], %s831_s4, %s831_s4, %s832_s13  }
 0x49c   :  { %507 = vsyncadd [#allocation15], 64  ;;  %s842_s0 = smov [#allocation14]  }
 0x49d   :  { %s508_s28 = sshll.u32 %s842_s0, 4  ;;  %s509_s28 = int_to_ptr.vmem [resolvable:$true] %s508_s28 }
 0x49e   :  { %s792_s7 = scalar_lea.vmem %s509_s28, 64  ;;  %s796_s22 = scalar_lea.vmem %s509_s28, 128 }
 0x49f   :  { %p793_p0 = scmp.ne.s32.totalorder %s509_s28, %s792_s7  ;;  %p797_p1 = scmp.lt.s32.totalorder %s509_s28, %s509_s28 }
 0x4a0   :  { %p798_p2 = scmp.lt.s32.totalorder %s796_s22, %s792_s7 }
 0x4a2   :  { %p799_p3 = por %p798_p2, %p797_p1 }
 0x4a4   :  { %p800_p4 = pnand %p799_p3, %p793_p0 }
 0x4a6   :  { %803 = shalt.err (!%p800_p4)
}
 0x4a7   :  { %s804_s25 = scalar_lea.hbm %s1066_s11, 64 }
 0x4a8   :  { %p805_p5 = scmp.ne.s32.totalorder %s1066_s11, %s804_s25  ;;  %p808_p6 = scmp.lt.u32.totalorder %s804_s25, %s1066_s11 }
 0x4aa   :  { %p810_p7 = pnand %p808_p6, %p805_p5 }
 0x4ac   :  { %813 = shalt.err (!%p810_p7)
}
 0x4ad   :  { %514 = dma.vmem_to_hbm [thread:$0]  %s509_s28, 64, %s1066_s11, [#allocation15], %s831_s4, %s831_s4, %s832_s13  }
 0x4ae   :  { %822 = dma.done.wait [#allocation4], 128  }
 0x4af   :  { %823 = vsyncadd [#allocation4], 4294967168 }
 0x4b0   :  { %824 = dma.done.wait [#allocation15], 128  }
 0x4b1   :  { %825 = vsyncadd [#allocation15], 4294967168 }
 0x4b2   :  { %521 = vsyncpa [#allocation3], 1 }
 0x4b3   :  { %522 = vsyncpa [#allocation6], 1 }
 0x4b4   :  { %523 = vsyncpa [#allocation9], 1 }
 0x4b5   :  { %524 = vsyncpa [#allocation12], 1 }
 0x4b6   :  { %525 = vsyncpa [#allocation4], 1 }
 0x4b7   :  { %526 = vsyncpa [#allocation15], 1 }

</bundles_post_ra>
